<compile_context>
chip_gen: v7x
topology: tpu7x:2x2x1
jax: 0.10.0
libtpu: 0.0.40
codegen_flags: <defaults>
</compile_context>

<pallas_src>
import jax
import jax.numpy as jnp
from jax.experimental import pallas as pl
from jax.experimental.pallas import tpu as pltpu


# ---------------------------------------------------------------------------
# Kernel 1: conv-as-matmul (lane-dense output) + bias + fused sum/sumsq stats
# ---------------------------------------------------------------------------
def _conv_stats_kernel(p_ref, w_ref, b_ref, y_ref, s_ref, q_ref):
    # p_ref : (1, CK, tL)  bf16 patches tile (spatial on lanes)
    # w_ref : (Cout, CK)   bf16 packed weight
    # b_ref : (Cout, 1)    f32 bias
    # y_ref : (1, Cout, tL) f32 conv output tile (lane-dense stores)
    # s_ref / q_ref : (1, Cout, 1) per-sample per-channel sum / sum-of-squares
    l = pl.program_id(1)

    y = jnp.dot(w_ref[...], p_ref[0],
                preferred_element_type=jnp.float32) + b_ref[...]
    y_ref[0] = y

    # Fused single-pass statistics, accumulated across the HW-tile axis into
    # resident output blocks (init on first tile).
    @pl.when(l == 0)
    def _():
        s_ref[...] = jnp.zeros_like(s_ref)
        q_ref[...] = jnp.zeros_like(q_ref)

    s_ref[0] += jnp.sum(y, axis=1, keepdims=True)
    q_ref[0] += jnp.sum(y * y, axis=1, keepdims=True)


def _pallas_conv2d(x, weight, bias, *, padding):
    """stride-1 Conv2d + bias.  Returns (y_nchw, sum, sumsq) where sum/sumsq
    are per-sample per-channel spatial reductions (for BatchNorm)."""
    N, Cin, H, W = x.shape
    Cout, _, kh, kw = weight.shape
    OH = H + 2 * padding - kh + 1
    OW = W + 2 * padding - kw + 1
    L = OH * OW
    CK = Cin * kh * kw

    if kh == 1 and kw == 1 and padding == 0:
        # 1x1 conv: no im2col, the reshape is free (pure metadata).
        patches = x.reshape(N, Cin, L)
    else:
        # TODO(synk): extract the k*k shifted views inside the kernel from one
        # padded-input block (halo read) instead of materialising the
        # k*k-inflated im2col tensor in HBM.
        xp = jnp.pad(x, ((0, 0), (0, 0), (padding, padding), (padding, padding)))
        cols = [xp[:, :, dy:dy + OH, dx:dx + OW]
                for dy in range(kh) for dx in range(kw)]
        # (N, Cin, k*k, OH, OW) -> (N, CK, HW): reduced dim on sublanes,
        # spatial on lanes (no transpose of the big tensor).
        patches = jnp.stack(cols, axis=2).reshape(N, CK, L)

    # bf16 MXU inputs, f32 accumulation.  Note: CK / Cout are tiny at these
    # toy shapes (MXU latency-bound); real FPN channel counts land CK on
    # multiples of 128 naturally.
    patches = patches.astype(jnp.bfloat16)
    w2d = weight.reshape(Cout, CK).astype(jnp.bfloat16)
    b2d = bias.reshape(Cout, 1).astype(jnp.float32)

    # HW tile: largest 128-multiple divisor (bounded for VMEM / pipelining).
    tl = L
    for cand in (2048, 1024, 512, 256, 128):
        if L % cand == 0:
            tl = cand
            break
    n_l = L // tl

    y, s, q = pl.pallas_call(
        _conv_stats_kernel,
        out_shape=(
            jax.ShapeDtypeStruct((N, Cout, L), jnp.float32),
            jax.ShapeDtypeStruct((N, Cout, 1), jnp.float32),
            jax.ShapeDtypeStruct((N, Cout, 1), jnp.float32),
        ),
        grid_spec=pltpu.PrefetchScalarGridSpec(
            num_scalar_prefetch=0,
            grid=(N, n_l),
            in_specs=[
                pl.BlockSpec((1, CK, tl), lambda n, l: (n, 0, l)),
                pl.BlockSpec((Cout, CK), lambda n, l: (0, 0)),
                pl.BlockSpec((Cout, 1), lambda n, l: (0, 0)),
            ],
            out_specs=[
                pl.BlockSpec((1, Cout, tl), lambda n, l: (n, 0, l)),
                pl.BlockSpec((1, Cout, 1), lambda n, l: (n, 0, 0)),
                pl.BlockSpec((1, Cout, 1), lambda n, l: (n, 0, 0)),
            ],
        ),
        compiler_params=pltpu.CompilerParams(
            dimension_semantics=("parallel", "arbitrary"),
            vmem_limit_bytes=48 * 1024 * 1024,  # v7x-safe budget
        ),
    )(patches, w2d, b2d)

    return y.reshape(N, Cout, OH, OW), s[..., 0], q[..., 0]


# ---------------------------------------------------------------------------
# Kernel 2: BatchNorm affine (precomputed scale/shift) + Swish
# ---------------------------------------------------------------------------
def _bn_swish_kernel(y_ref, sc_ref, sh_ref, o_ref):
    z = y_ref[0] * sc_ref[...] + sh_ref[...]
    # Swish: z * sigmoid(z); exp + reciprocal ride the EUP slot.
    o_ref[0] = z * pl.reciprocal(1.0 + jnp.exp(-z), approx=True)


def _pallas_bn_swish(y, scale, shift):
    N, C, H, W = y.shape
    L = H * W
    out = pl.pallas_call(
        _bn_swish_kernel,
        out_shape=jax.ShapeDtypeStruct((N, C, L), jnp.float32),
        grid_spec=pltpu.PrefetchScalarGridSpec(
            num_scalar_prefetch=0,
            grid=(N,),
            in_specs=[
                pl.BlockSpec((1, C, L), lambda n: (n, 0, 0)),
                pl.BlockSpec((C, 1), lambda n: (0, 0)),
                pl.BlockSpec((C, 1), lambda n: (0, 0)),
            ],
            out_specs=pl.BlockSpec((1, C, L), lambda n: (n, 0, 0)),
        ),
        compiler_params=pltpu.CompilerParams(
            dimension_semantics=("parallel",),
            vmem_limit_bytes=48 * 1024 * 1024,
        ),
    )(y.reshape(N, C, L), scale.reshape(C, 1).astype(jnp.float32),
      shift.reshape(C, 1).astype(jnp.float32))
    return out.reshape(N, C, H, W)


def conv_bn_swish(x, w, b, gamma, beta, *, padding, eps=1e-5):
    """Conv2d -> BatchNorm2d (training-mode batch statistics) -> Swish."""
    y, s, q = _pallas_conv2d(x, w, b, padding=padding)
    N, C, OH, OW = y.shape
    count = N * OH * OW
    mean = jnp.sum(s, axis=0) / count                    # (C,)
    var = jnp.sum(q, axis=0) / count - mean * mean       # biased variance
    inv = jax.lax.rsqrt(var + eps)
    scale = gamma * inv
    shift = beta - mean * scale
    return _pallas_bn_swish(y, scale, shift)


# ---------------------------------------------------------------------------
# Kernel 3: bilinear x2 (align_corners=True) upsample + lateral add
# ---------------------------------------------------------------------------
def _upsample_add_kernel(x_ref, bt_ref, lat_ref, o_ref):
    o_ref[0] = (jnp.dot(x_ref[0], bt_ref[...],
                        preferred_element_type=jnp.float32) + lat_ref[0])


def _interp_matrix(n_out, n_in):
    """(n_out, n_in) bilinear interpolation matrix, align_corners=True."""
    if n_in == 1:
        return jnp.ones((n_out, 1), jnp.float32)
    src = jnp.arange(n_out, dtype=jnp.float32) * (n_in - 1) / (n_out - 1)
    i0 = jnp.clip(jnp.floor(src).astype(jnp.int32), 0, n_in - 2)
    frac = src - i0.astype(jnp.float32)
    rows = jnp.arange(n_out)
    A = jnp.zeros((n_out, n_in), jnp.float32)
    A = A.at[rows, i0].add(1.0 - frac)
    A = A.at[rows, i0 + 1].add(frac)
    return A


def pallas_upsample2x_add(x, lateral):
    N, C, h, w = x.shape
    H2, W2 = 2 * h, 2 * w
    Ah = _interp_matrix(H2, h)
    Aw = _interp_matrix(W2, w)
    # TODO(synk): for large spatial dims use a separable two-matmul (or
    # gather) bilinear kernel; this Kronecker operator is O((hw)^2) memory.
    Bt = jnp.einsum('ur,vc->rcuv', Ah, Aw).reshape(h * w, H2 * W2)
    out = pl.pallas_call(
        _upsample_add_kernel,
        out_shape=jax.ShapeDtypeStruct((N, C, H2 * W2), jnp.float32),
        grid_spec=pltpu.PrefetchScalarGridSpec(
            num_scalar_prefetch=0,
            grid=(N,),
            in_specs=[
                pl.BlockSpec((1, C, h * w), lambda n: (n, 0, 0)),
                pl.BlockSpec((h * w, H2 * W2), lambda n: (0, 0)),
                pl.BlockSpec((1, C, H2 * W2), lambda n: (n, 0, 0)),
            ],
            out_specs=pl.BlockSpec((1, C, H2 * W2), lambda n: (n, 0, 0)),
        ),
        compiler_params=pltpu.CompilerParams(
            dimension_semantics=("parallel",),
            vmem_limit_bytes=48 * 1024 * 1024,
        ),
    )(x.reshape(N, C, h * w), Bt, lateral.reshape(N, C, H2 * W2))
    return out.reshape(N, C, H2, W2)


# ---------------------------------------------------------------------------
# FPNDecoder forward (matches the PyTorch module)
# ---------------------------------------------------------------------------
def fpn_decoder_forward(xs, params, *, eps=1e-5):
    intra = xs[-1]
    p0 = params['out0']
    outputs = [conv_bn_swish(intra, p0['w'], p0['b'], p0['gamma'], p0['beta'],
                             padding=0, eps=eps)]
    for i in range(1, len(xs)):
        pin = params[f'inner{i}']
        lat, _, _ = _pallas_conv2d(xs[-i - 1], pin['w'], pin['b'], padding=0)
        intra = pallas_upsample2x_add(intra, lat)
        po = params[f'out{i}']
        outputs.append(conv_bn_swish(intra, po['w'], po['b'], po['gamma'],
                                     po['beta'], padding=1, eps=eps))
    return outputs


# ---------------------------------------------------------------------------
# Pure-JAX reference (verification only)
# ---------------------------------------------------------------------------
def _reference_fpn(xs, params, eps=1e-5):
    def conv(x, w, b, padding):
        y = jax.lax.conv_general_dilated(
            x, w, window_strides=(1, 1),
            padding=[(padding, padding), (padding, padding)],
            dimension_numbers=("NCHW", "OIHW", "NCHW"))
        return y + b[None, :, None, None]

    def bn_swish(y, gamma, beta):
        mean = jnp.mean(y, axis=(0, 2, 3), keepdims=True)
        var = jnp.mean((y - mean) ** 2, axis=(0, 2, 3), keepdims=True)
        z = (y - mean) * jax.lax.rsqrt(var + eps)
        z = z * gamma[None, :, None, None] + beta[None, :, None, None]
        return z * jax.nn.sigmoid(z)

    def upsample(x):
        _, _, h, w = x.shape
        Ah = _interp_matrix(2 * h, h)
        Aw = _interp_matrix(2 * w, w)
        return jnp.einsum('ur,vk,ncrk->ncuv', Ah, Aw, x)

    intra = xs[-1]
    p0 = params['out0']
    out = [bn_swish(conv(intra, p0['w'], p0['b'], 0), p0['gamma'], p0['beta'])]
    for i in range(1, len(xs)):
        pin = params[f'inner{i}']
        intra = upsample(intra) + conv(xs[-i - 1], pin['w'], pin['b'], 0)
        po = params[f'out{i}']
        out.append(bn_swish(conv(intra, po['w'], po['b'], 1),
                            po['gamma'], po['beta']))
    return out


def _init_conv(key, cout, cin, k):
    kw_, kb_ = jax.random.split(key)
    fan_in = cin * k * k
    wb = (6.0 / fan_in) ** 0.5
    w = jax.random.uniform(kw_, (cout, cin, k, k), jnp.float32, -wb, wb)
    bb = 1.0 / fan_in ** 0.5
    b = jax.random.uniform(kb_, (cout,), jnp.float32, -bb, bb)
    return w, b


if __name__ == "__main__":
    # FPNDecoder(feat_chs=[4, 8]) on a 2-level pyramid (finest -> coarsest):
    #   xs[0]: (2, 4, 16, 16)   xs[1]: (2, 8, 8, 8)
    key = jax.random.PRNGKey(0)
    feat_chs = [4, 8]
    rev = feat_chs[::-1]          # [8, 4]
    final_ch = rev[0]             # 8
    N = 2

    k_x0, k_x1, k0, k1, k2 = jax.random.split(key, 5)
    xs = [jax.random.normal(k_x0, (N, feat_chs[0], 16, 16), jnp.float32),
          jax.random.normal(k_x1, (N, feat_chs[1], 8, 8), jnp.float32)]

    params = {}
    w, b = _init_conv(k0, rev[0], final_ch, 1)
    params['out0'] = dict(w=w, b=b, gamma=jnp.ones(rev[0]), beta=jnp.zeros(rev[0]))
    w, b = _init_conv(k1, final_ch, rev[1], 1)
    params['inner1'] = dict(w=w, b=b)
    w, b = _init_conv(k2, rev[1], final_ch, 3)
    params['out1'] = dict(w=w, b=b, gamma=jnp.ones(rev[1]), beta=jnp.zeros(rev[1]))

    outs = fpn_decoder_forward(xs, params)
    outs = jax.block_until_ready(outs)

    refs = _reference_fpn(xs, params)
    assert len(outs) == 2
    assert outs[0].shape == (N, 8, 8, 8)
    assert outs[1].shape == (N, 4, 16, 16)
    for o, r in zip(outs, refs):
        # bf16 MXU inputs (per perf review) -> slightly looser tolerance
        assert jnp.allclose(o, r, atol=3e-2, rtol=3e-2), \
            f"mismatch vs reference: max abs err {jnp.max(jnp.abs(o - r))}"

    print("KERNEL_OK")
</pallas_src>

<mosaic_0001>
module attributes {stable_mosaic.version = 11 : i64} {
  func.func @_conv_stats_kernel(%arg0: i32, %arg1: i32, %arg2: memref<1x8x64xbf16, #tpu.memory_space<vmem>>, %arg3: memref<8x8xbf16, #tpu.memory_space<vmem>>, %arg4: memref<8x1xf32, #tpu.memory_space<vmem>>, %arg5: memref<1x8x64xf32, #tpu.memory_space<vmem>>, %arg6: memref<1x8x1xf32, #tpu.memory_space<vmem>>, %arg7: memref<1x8x1xf32, #tpu.memory_space<vmem>>) attributes {dimension_semantics = [#tpu.dimension_semantics<parallel>, #tpu.dimension_semantics<arbitrary>], iteration_bounds = array<i64: 2, 1>, scalar_prefetch = 0 : i64, scratch_operands = 0 : i64, tpu.core_type = #tpu.core_type<tc>, window_params = [{transform_indices = @transform_0, window_bounds = array<i64: 1, 8, 64>}, {pipeline_mode = #tpu.pipeline_mode<synchronous>, transform_indices = @transform_1, window_bounds = array<i64: 8, 8>}, {pipeline_mode = #tpu.pipeline_mode<synchronous>, transform_indices = @transform_2, window_bounds = array<i64: 8, 1>}, {transform_indices = @transform_3, window_bounds = array<i64: 1, 8, 64>}, {transform_indices = @transform_4, window_bounds = array<i64: 1, 8, 1>}, {transform_indices = @transform_5, window_bounds = array<i64: 1, 8, 1>}]} {
    %c0 = arith.constant 0 : index
    %c0_0 = arith.constant 0 : index
    %0 = vector.load %arg3[%c0, %c0_0] : memref<8x8xbf16, #tpu.memory_space<vmem>>, vector<8x8xbf16>
    %c0_1 = arith.constant 0 : index
    %c0_2 = arith.constant 0 : index
    %c0_3 = arith.constant 0 : index
    %1 = vector.load %arg2[%c0_1, %c0_2, %c0_3] : memref<1x8x64xbf16, #tpu.memory_space<vmem>>, vector<1x8x64xbf16>
    %2 = vector.shape_cast %1 : vector<1x8x64xbf16> to vector<8x64xbf16>
    %cst = arith.constant dense<0.000000e+00> : vector<8x64xf32>
    %3 = tpu.matmul %0, %2, %cst {dimension_numbers = #tpu.dot_dimension_numbers<[1], [0], [0], [1], [0, 0, 1, 1], [], []>} : vector<8x8xbf16>, vector<8x64xbf16>, vector<8x64xf32> -> vector<8x64xf32>
    %c0_4 = arith.constant 0 : index
    %c0_5 = arith.constant 0 : index
    %4 = vector.load %arg4[%c0_4, %c0_5] : memref<8x1xf32, #tpu.memory_space<vmem>>, vector<8x1xf32>
    %5 = vector.broadcast %4 : vector<8x1xf32> to vector<8x64xf32>
    %6 = arith.addf %3, %5 : vector<8x64xf32>
    %c0_6 = arith.constant 0 : index
    %c0_7 = arith.constant 0 : index
    %c0_8 = arith.constant 0 : index
    %7 = vector.load %arg5[%c0_6, %c0_7, %c0_8] : memref<1x8x64xf32, #tpu.memory_space<vmem>>, vector<1x8x64xf32>
    %8 = vector.shape_cast %7 : vector<1x8x64xf32> to vector<8x64xf32>
    %9 = vector.shape_cast %6 : vector<8x64xf32> to vector<1x8x64xf32>
    tpu.vector_store %arg5[%c0_6, %c0_7, %c0_8], %9 {strides = array<i32>} : memref<1x8x64xf32, #tpu.memory_space<vmem>>, vector<1x8x64xf32>,
    %c0_i32 = arith.constant 0 : i32
    %10 = arith.cmpi eq, %arg1, %c0_i32 : i32
    %11 = arith.extui %10 : i1 to i32
    %c0_i32_9 = arith.constant 0 : i32
    %12 = arith.cmpi ne, %11, %c0_i32_9 : i32
    scf.if %12 {
      %cst_24 = arith.constant 0.000000e+00 : f32
      %30 = vector.broadcast %cst_24 : f32 to vector<1x8x1xf32>
      %c0_25 = arith.constant 0 : index
      %c0_26 = arith.constant 0 : index
      %c0_27 = arith.constant 0 : index
      %31 = vector.load %arg6[%c0_25, %c0_26, %c0_27] : memref<1x8x1xf32, #tpu.memory_space<vmem>>, vector<1x8x1xf32>
      tpu.vector_store %arg6[%c0_25, %c0_26, %c0_27], %30 {strides = array<i32>} : memref<1x8x1xf32, #tpu.memory_space<vmem>>, vector<1x8x1xf32>,
      %cst_28 = arith.constant 0.000000e+00 : f32
      %32 = vector.broadcast %cst_28 : f32 to vector<1x8x1xf32>
      %c0_29 = arith.constant 0 : index
      %c0_30 = arith.constant 0 : index
      %c0_31 = arith.constant 0 : index
      %33 = vector.load %arg7[%c0_29, %c0_30, %c0_31] : memref<1x8x1xf32, #tpu.memory_space<vmem>>, vector<1x8x1xf32>
      tpu.vector_store %arg7[%c0_29, %c0_30, %c0_31], %32 {strides = array<i32>} : memref<1x8x1xf32, #tpu.memory_space<vmem>>, vector<1x8x1xf32>,
    } else {
    }
    %c0_10 = arith.constant 0 : index
    %c0_11 = arith.constant 0 : index
    %c0_12 = arith.constant 0 : index
    %13 = vector.load %arg6[%c0_10, %c0_11, %c0_12] : memref<1x8x1xf32, #tpu.memory_space<vmem>>, vector<1x8x1xf32>
    %14 = vector.shape_cast %13 : vector<1x8x1xf32> to vector<8x1xf32>
    %cst_13 = arith.constant dense<0.000000e+00> : vector<8xf32>
    %15 = vector.multi_reduction <add>, %6, %cst_13 [1] : vector<8x64xf32> to vector<8xf32>
    %16 = vector.shape_cast %15 : vector<8xf32> to vector<8x1xf32>
    %17 = arith.addf %14, %16 : vector<8x1xf32>
    %c0_14 = arith.constant 0 : index
    %c0_15 = arith.constant 0 : index
    %c0_16 = arith.constant 0 : index
    %18 = vector.load %arg6[%c0_14, %c0_15, %c0_16] : memref<1x8x1xf32, #tpu.memory_space<vmem>>, vector<1x8x1xf32>
    %19 = vector.shape_cast %18 : vector<1x8x1xf32> to vector<8x1xf32>
    %20 = vector.shape_cast %17 : vector<8x1xf32> to vector<1x8x1xf32>
    tpu.vector_store %arg6[%c0_14, %c0_15, %c0_16], %20 {strides = array<i32>} : memref<1x8x1xf32, #tpu.memory_space<vmem>>, vector<1x8x1xf32>,
    %c0_17 = arith.constant 0 : index
    %c0_18 = arith.constant 0 : index
    %c0_19 = arith.constant 0 : index
    %21 = vector.load %arg7[%c0_17, %c0_18, %c0_19] : memref<1x8x1xf32, #tpu.memory_space<vmem>>, vector<1x8x1xf32>
    %22 = vector.shape_cast %21 : vector<1x8x1xf32> to vector<8x1xf32>
    %23 = arith.mulf %6, %6 : vector<8x64xf32>
    %cst_20 = arith.constant dense<0.000000e+00> : vector<8xf32>
    %24 = vector.multi_reduction <add>, %23, %cst_20 [1] : vector<8x64xf32> to vector<8xf32>
    %25 = vector.shape_cast %24 : vector<8xf32> to vector<8x1xf32>
    %26 = arith.addf %22, %25 : vector<8x1xf32>
    %c0_21 = arith.constant 0 : index
    %c0_22 = arith.constant 0 : index
    %c0_23 = arith.constant 0 : index
    %27 = vector.load %arg7[%c0_21, %c0_22, %c0_23] : memref<1x8x1xf32, #tpu.memory_space<vmem>>, vector<1x8x1xf32>
    %28 = vector.shape_cast %27 : vector<1x8x1xf32> to vector<8x1xf32>
    %29 = vector.shape_cast %26 : vector<8x1xf32> to vector<1x8x1xf32>
    tpu.vector_store %arg7[%c0_21, %c0_22, %c0_23], %29 {strides = array<i32>} : memref<1x8x1xf32, #tpu.memory_space<vmem>>, vector<1x8x1xf32>,
    return
  }
  func.func @transform_0(%arg0: i32, %arg1: i32) -> (i32, i32, i32) {
    %c0_i32 = arith.constant 0 : i32
    %c0_i32_0 = arith.constant 0 : i32
    return %arg0, %c0_i32, %arg1 : i32, i32, i32
  }
  func.func @transform_1(%arg0: i32, %arg1: i32) -> (i32, i32) {
    %c0_i32 = arith.constant 0 : i32
    %c0_i32_0 = arith.constant 0 : i32
    %c0_i32_1 = arith.constant 0 : i32
    return %c0_i32, %c0_i32_0 : i32, i32
  }
  func.func @transform_2(%arg0: i32, %arg1: i32) -> (i32, i32) {
    %c0_i32 = arith.constant 0 : i32
    %c0_i32_0 = arith.constant 0 : i32
    %c0_i32_1 = arith.constant 0 : i32
    return %c0_i32, %c0_i32_0 : i32, i32
  }
  func.func @transform_3(%arg0: i32, %arg1: i32) -> (i32, i32, i32) {
    %c0_i32 = arith.constant 0 : i32
    %c0_i32_0 = arith.constant 0 : i32
    return %arg0, %c0_i32, %arg1 : i32, i32, i32
  }
  func.func @transform_4(%arg0: i32, %arg1: i32) -> (i32, i32, i32) {
    %c0_i32 = arith.constant 0 : i32
    %c0_i32_0 = arith.constant 0 : i32
    %c0_i32_1 = arith.constant 0 : i32
    return %arg0, %c0_i32, %c0_i32_0 : i32, i32, i32
  }
  func.func @transform_5(%arg0: i32, %arg1: i32) -> (i32, i32, i32) {
    %c0_i32 = arith.constant 0 : i32
    %c0_i32_0 = arith.constant 0 : i32
    %c0_i32_1 = arith.constant 0 : i32
    return %arg0, %c0_i32, %c0_i32_0 : i32, i32, i32
  }
}

</mosaic_0001>

<bundles_post_ra>
// kernel: tpu_custom_call.1
= control target key start
LH: loop header
LB: loop body
LE: loop exit
PB: predicated region body
PF: predicated region fallthrough
CT: control target
= control target key end

     0   :  { %11 = vsyncpa [#allocation3], 0  ;;  %s825_s0 = inlined_call_operand.vmem [shape: bf16[2,8,64], index: 0, kind: input, shape index: {}]   ;;  %s826_s1 = inlined_call_operand.vmem [shape: bf16[8,8], index: 1, kind: input, shape index: {}]   ;;  %s827_s2 = inlined_call_operand.vmem [shape: f32[8,1], index: 2, kind: input, shape index: {}]   ;;  %s828_s3 = inlined_call_operand.hbm [shape: f32[2,8,64], index: 3, kind: output, shape index: {0}]   ;;  %s829_s4 = inlined_call_operand.vmem [shape: f32[2,8,1], index: 4, kind: output, shape index: {1}]   ;;  %s830_s5 = inlined_call_operand.vmem [shape: f32[2,8,1], index: 5, kind: output, shape index: {2}]  }
   0x1   :  { %13 = vsyncpa [#allocation3 + $0x1], 0  ;;  %s689_s18 = smov 0   ;;  %s691_s19 = smov 0  }
   0x2   :  { %s693_s20 = smov 0   ;;  %s695_s21 = smov 0  }
   0x3   :  { %s697_s22 = smov 0   ;;  %s699_s23 = smov 0  }
   0x4 LB: > { %s494_s24 = sadd.s32 4294967295, %s653_s23   ;;  %s495_s25 = sadd.s32 4294967294, %s653_s23   ;;  %s653_s23 = sphi %s699_s23, %s19_s23   ;;  %s649_s22 = sphi %s697_s22, %s837_s22   ;;  %s645_s21 = sphi %s695_s21, %s836_s21   ;;  %s641_s20 = sphi %s693_s20, %s835_s20   ;;  %s637_s19 = sphi %s691_s19, %s834_s19   ;;  %s633_s18 = sphi %s689_s18, %s833_s18  }
   0x5   : > { %s31_s26 = sadd.s32 1, %s649_s22  ;;  %s110_s27 = sadd.s32 1, %s641_s20 }
   0x6   : > { %p33_p0 = scmp.ge.s32.totalorder %s31_s26, 2  ;;  %p120_p1 = scmp.ne.s32.totalorder %s641_s20, %s637_s19 }
   0x7   : > { %p121_p2 = scmp.eq.s32.totalorder %s494_s24, 1  ;;  %p126_p3 = scmp.ne.s32.totalorder %s637_s19, %s633_s18 }
   0x8   : > { %s839_s26 = smov (%p33_p0, %s31_s26), 0  ;;  %p127_p5 = scmp.eq.s32.totalorder %s495_s25, 1 }
   0x9   : > { %p729_p4 = por %p121_p2, %p120_p1  ;;  %s105_s29 = ssub.s32 %s649_s22, %s839_s26 }
   0xa   : > { %p498_p6 = scmp.ge.s32.totalorder %s653_s23, 1  ;;  %p108_p7 = scmp.eq.s32.totalorder %s105_s29, 0 }
   0xb   : > { %p736_p8 = por %p127_p5, %p126_p3  ;;  %p213_p9 = scmp.lt.s32.totalorder %s653_s23, 3 }
   0xc   : > { %s742_s6 = scalar_select %p108_p7, %s641_s20, %s110_s27  }
   0xd   : > { %p214_p10 = pnand %p498_p6, %p213_p9 }
   0xe   : > { %p251_p11 = scmp.lt.s32.totalorder (!%p214_p10), %s645_s21, 1  ;;  %v655_v0 = vmov (!%p214_p10), 0.0   ;;  %vm656_vm0 = vmmov (!%p214_p10), 0   ;;  %v269_v1 = vld [vmem:[%s827_s2] sm:$0xff] (!%p214_p10)  ;;  %v657_v2 = vmov (!%p214_p10), 0   ;;  %vm279_vm1 = vcmask (!%p214_p10), 1043456  }
   0xf   : > { %217 = sbr.rel (%p214_p10) target bundleno = 393 (0x189), region = 32  ;;  %510 = vmatprep.subr.bf16.mxu0 (!%p214_p10), %v655_v0  ;;  %512 = vmatprep.mubr.msk.bf16.mxu0 (!%p214_p10), %vm656_vm0, %v655_v0  ;;  %v267_v5 = vld [vmem:[%s826_s1] sm:$0xf] (!%p214_p10)  ;;  %vm275_vm2 = vcmask (!%p214_p10), 64512   ;;  %vm329_vm3 = vcmask (!%p214_p10), 7168   ;;  %s236_s27 = sand.u32 (!%p214_p10), 1, %s637_s19  }
  0x10   : > { %574 = vset.pattern.permute.xlu0 (!%p214_p10), %v657_v2  ;;  %s499_s29 = sshll.u32 (!%p214_p10), %s236_s27, 3  ;;  %vm323_vm4 = vcmask (!%p214_p10), 523264   ;;  %s505_s11 = sshll.u32 (!%p214_p10), %s645_s21, 7 }
  0x11   : > { %272 = vperm.xlu0 (!%p214_p10), %574, %v269_v1   ;;  %s238_s7 = scalar_lea.vmem (!%p214_p10), [#allocation2], %s499_s29  ;;  %s778_s15 = scalar_lea.hbm (!%p214_p10), %s828_s3, %s505_s11 }
  0x12   : > { %s369_s12 = sshll.u32 (!%p214_p10), %s238_s7, 4  ;;  %s347_s17 = scalar_lea.sflag (!%p214_p10), [#allocation3], %s236_s27  ;;  %s370_s12 = int_to_ptr.vmem [resolvable:$true] %s369_s12 }
  0x13   : > { %s575_s24 = scalar_lea.vmem (!%p214_p10), %s370_s12, 128  ;;  %s658_s29 = smov (!%p214_p10), [#allocation2]  }
  0x14   : > { %p576_p12 = scmp.ne.s32.totalorder (!%p214_p10), %s370_s12, %s575_s24 }
  0x16   : > { %s749_s9 = scalar_select %p251_p11, %s645_s21, 1 }
  0x17   : > { %p577_p13 = pnand %p576_p12, %p729_p4 }
  0x18   : > { %s500_s10 = sshll.u32 %s749_s9, 2  ;;  %s501_s16 = sshll.u32 %s749_s9, 3 }
  0x19   : > { %s257_s13 = scalar_lea.vmem %s825_s0, %s500_s10  ;;  %s762_s25 = scalar_lea.vmem %s829_s4, %s501_s16 }
  0x1a   : > { %v268_v3 = vld [vmem:[%s257_s13] sm:$0xf]  ;;  %330 = vst.msk [vmem:[%s762_s25] sm:$0xff] %vm329_vm3, %v655_v0  ;;  %s770_s10 = scalar_lea.vmem %s830_s5, %s501_s16  ;;  %p578_p0 = pneg %p577_p13 }
  0x1b   : > { %v281_v4 = vsel %vm279_vm1, %v268_v3, 0  ;;  %331 = vst.msk [vmem:[%s770_s10] sm:$0xff] %vm329_vm3, %v655_v0  ;;  %s579_s16 = sshll.u32 %s658_s29, 4  ;;  %s580_s16 = int_to_ptr.vmem [resolvable:$false] %s579_s16 }
  0x1c   : > { %511 = vmatpush3.bf16.msra.mxu0 %v281_v4  ;;  %s581_s8 = scalar_lea.vmem %s580_s16, 256  ;;  %p582_p1 = scmp.lt.s32.totalorder %s370_s12, %s580_s16 }
  0x1d   : > { %p583_p2 = scmp.lt.s32.totalorder %s581_s8, %s575_s24 }
  0x1f   : > { %513 = vmatmul.mubr.msk.bf16.vlgmr.msra.gmra.mrb[0].mxu0 %vm275_vm2, %v267_v5  ;;  %p584_p3 = por %p583_p2, %p582_p1 }
  0x21   : > { %p585_p5 = pnand %p584_p3, %p578_p0 }
  0x90   : > { %v273_v6 = vpop.permute.xlu0 %272 }
  0xf2   : > { %v317_v7 = vpop.f32.mrb[0].mxu0 }
  0xf3   : > { %v318_v8 = vadd.f32 %v317_v7, %v273_v6  ;;  %v514_v9 = vpop.f32.mrb[1].mxu0 }
  0xf4   : > { %v320_v10 = vpop.f32.mrb[2].mxu0 }
  0xf5   : > { %v515_v11 = vpop.f32.mrb[3].mxu0  ;;  %v333_v12 = vsel %vm323_vm4, %v318_v8, 0.0  ;;  %v340_v13 = vmul.f32 %v318_v8, %v318_v8  ;;  %324 = vst.msk [vmem:[%s238_s7] sm:$0xff] %vm323_vm4, %v318_v8 }
  0xf6   : > { %334 = vadd.xlane.f32.xlu0 %v333_v12 }
  0xf7   : > { %v341_v14 = vsel %vm323_vm4, %v340_v13, 0.0 }
  0xf8   : > { %342 = vadd.xlane.f32.xlu1 %v341_v14 }
  0xf9   : > { %588 = shalt.err (!%p585_p5)
}
  0xfa   : > { %s589_s21 = scalar_lea.hbm %s778_s15, 128  ;;  %s593_s9 = scalar_lea.hbm %s828_s3, 256 }
  0xfb   : > { %p590_p6 = scmp.ne.s32.totalorder %s778_s15, %s589_s21  ;;  %p594_p10 = scmp.lt.u32.totalorder %s778_s15, %s828_s3 }
  0xfc   : > { %p595_p11 = scmp.lt.u32.totalorder %s593_s9, %s589_s21  ;;  %p597_p13 = scmp.lt.u32.totalorder %s589_s21, %s778_s15 }
  0xfd   : > { %p591_p7 = pnand %p590_p6, %p729_p4 }
  0xfe   : > { %p596_p12 = por %p595_p11, %p594_p10 }
  0xff   : > { %p592_p9 = pneg %p591_p7 }
 0x100   : > { %p598_p0 = por %p597_p13, %p596_p12 }
 0x102   : > { %p599_p1 = pnand %p598_p0, %p592_p9 }
 0x104   : > { %602 = shalt.err (!%p599_p1)
}
 0x105   : > { %516 = dma.vmem_to_hbm [thread:$0]  (%p729_p4), %s370_s12, 128, %s778_s15, %s347_s17   ;;  %v332_v15 = vld [vmem:[%s762_s25] sm:$0xff] }
 0x106   : > { %v339_v17 = vld [vmem:[%s770_s10] sm:$0xff] }
 0x183   : > { %v335_v16 = vpop.xlane.xlu0 %334 }
 0x184   : > { %v336_v18 = vadd.f32 %v335_v16, %v332_v15 }
 0x185   : > { %v343_v19 = vpop.xlane.xlu1 %342 }
 0x186   : > { %338 = vst.msk [vmem:[%s762_s25] sm:$0xff] %vm329_vm3, %v336_v18  ;;  %v344_v20 = vadd.f32 %v343_v19, %v339_v17 }
 0x188   : > { %345 = vst.msk [vmem:[%s770_s10] sm:$0xff] %vm329_vm3, %v344_v20 }
 0x189 PF: > { %p522_p2 = scmp.ge.s32.totalorder %s653_s23, 2  ;;  %s387_s28 = sand.u32 1, %s633_s18  }
 0x18a   : > { %s388_s14 = scalar_lea.sflag [#allocation3], %s387_s28 }
 0x18b   : > { %p519_p3 = pnand %p522_p2, %p736_p8 }
 0x18d   : > { %628 = dma.done.wait (!%p519_p3), %s388_s14, 128  }
 0x18e   : > { %630 = vsyncadd (!%p519_p3), %s388_s14, 4294967168  ;;  %s19_s23 = sadd.s32 1, %s653_s23   ;;  %s833_s18 = smov %s637_s19 }
 0x18f   : > { %p16_p4 = scmp.ge.s32.totalorder %s19_s23, 4   ;;  %s834_s19 = smov %s641_s20 }
 0x190   : > { %s835_s20 = smov %s742_s6  ;;  %s836_s21 = smov %s649_s22 }
 0x191   : > { %s837_s22 = smov %s839_s26  ;;  %18 = sbr.rel (!%p16_p4) target bundleno = 4 (0x4), region = 95 }
 0x198   :  { %407 = vsyncpa [#allocation3], 1 }
 0x199   :  { %409 = vsyncpa [#allocation3 + $0x1], 1 }

</bundles_post_ra>
